<compile_context>
chip_gen: v5e
topology: v5e:2x2
jax: 0.10.0
libtpu: 0.0.40
codegen_flags: <defaults>
</compile_context>

<pallas_src>
import functools

import jax
import jax.numpy as jnp
from jax import lax
from jax.experimental import pallas as pl
from jax.experimental.pallas import tpu as pltpu

# Contract the last axis of both operands: (F, D) x (TILE_B, D) -> (F, TILE_B).
_NT_DIM_NUMBERS = (((1,), (1,)), ((), ()))


def _quad_goal_kernel(x_ref, goal_ref, wcat_ref, bcat_ref, w1_ref, b1_ref,
                      w2_ref, b2_ref, o_ref, *, hidden_size: int):
    H = hidden_size

    # (TILE_B, D) tile of x; subtract the goal point in f32 (reference op order).
    xm = x_ref[...] - goal_ref[...]                                  # (TB, D)

    # Fused layer-0 + goal-branch matmul in feature-major form:
    #   z[:H, b]  = w0 @ (x_b - goal) + (b0 + w0 @ goal)  == w0 @ x_b + b0
    #   z[H:, b]  = wg @ (x_b - goal)                     == goal branch
    z = lax.dot_general(wcat_ref[...], xm, dimension_numbers=_NT_DIM_NUMBERS,
                        preferred_element_type=jnp.float32)          # (H+M, TB)
    z = z + bcat_ref[...]                                            # col bias

    # Goal branch squared-norm reduced immediately (ends its live range).
    g = z[H:, :]
    goal_sq = jnp.sum(g * g, axis=0, keepdims=True)                  # (1, TB)

    # MLP trunk, all (features, TILE_B): tiny-weight LHS, lane-dense RHS.
    h = jnp.maximum(z[:H, :], 0.0)                                   # (H, TB)
    h = jnp.dot(w1_ref[...], h, preferred_element_type=jnp.float32) + b1_ref[...]
    h = jnp.maximum(h, 0.0)                                          # (H, TB)
    m = jnp.dot(w2_ref[...], h, preferred_element_type=jnp.float32) + b2_ref[...]

    # Squared-norm over the feature (sublane) axis -> lane-dense (1, TB) store.
    o_ref[...] = (jnp.sum(m * m, axis=0, keepdims=True) + goal_sq).astype(o_ref.dtype)


def quad_goal_mlp(x, params, *, tile_b: int = 512):
    """x: (B, D) float32.  params: torch-layout weights (see init_params)."""
    B, D = x.shape
    H = params["w0"].shape[0]
    M = params["w2"].shape[0]
    f32 = jnp.float32

    x = x.astype(f32)
    w0, b0 = params["w0"].astype(f32), params["b0"].astype(f32)
    w1, b1 = params["w1"].astype(f32), params["b1"].astype(f32)
    w2, b2 = params["w2"].astype(f32), params["b2"].astype(f32)
    wg = params["wg"].astype(f32)
    goal = params["goal"].astype(f32).reshape(D)

    # ---- one-time parameter prep (f32) --------------------------------------
    # Fused layer-0 / goal weight, rows = [H trunk features ; M goal features].
    w_cat = jnp.concatenate([w0, wg], axis=0)                        # (H+M, D)
    # Kernel feeds (x - goal); compensate the trunk bias with + w0 @ goal so the
    # trunk equals x @ w0^T + b0.  The goal branch keeps the reference op order
    # ((x - goal) then matmul) -> no cancellation blow-up near the goal point.
    b_cat = jnp.concatenate([b0 + w0 @ goal, jnp.zeros((M,), f32)])[:, None]  # (H+M,1)
    b1c, b2c = b1[:, None], b2[:, None]                              # (H,1),(M,1)
    goal_row = goal[None, :]                                         # (1, D)

    # ---- batch tiling (no wrapper-side padding) ------------------------------
    if B > tile_b:
        tile_b = max(128, (tile_b // 128) * 128)   # lane-dense out blocks
    else:
        tile_b = B                                  # single full-array block
    grid = (pl.cdiv(B, tile_b),)

    kernel = functools.partial(_quad_goal_kernel, hidden_size=H)

    # Weights/biases: constant block index -> fetched once, VMEM-resident.
    resident = lambda a: pl.BlockSpec(a.shape, lambda i: (0, 0))

    out = pl.pallas_call(
        kernel,
        out_shape=jax.ShapeDtypeStruct((1, B), jnp.float32),
        grid=grid,
        in_specs=[
            pl.BlockSpec((tile_b, D), lambda i: (i, 0)),   # x: streamed tiles
            resident(goal_row),
            resident(w_cat), resident(b_cat),
            resident(w1), resident(b1c),
            resident(w2), resident(b2c),
        ],
        out_specs=pl.BlockSpec((1, tile_b), lambda i: (0, i)),   # lane-dense
        compiler_params=pltpu.CompilerParams(
            dimension_semantics=("parallel",)),
    )(x, goal_row, w_cat, b_cat, w1, b1c, w2, b2c)

    return out.reshape(B, 1)


def init_params(key, input_size, hidden_size=32, mlp_output_size=32,
                goal_point=None):
    """Deterministic synthetic init, torch nn.Linear layout (out, in)."""
    ks = jax.random.split(key, 8)

    def uniform(k, shape, fan_in):
        bound = 1.0 / jnp.sqrt(fan_in)
        return jax.random.uniform(k, shape, jnp.float32, -bound, bound)

    D, H, M = input_size, hidden_size, mlp_output_size
    if goal_point is None:
        goal_point = jnp.zeros((D,), jnp.float32)   # module default
    return {
        # MLP.l0: Linear(D, H)
        "w0": uniform(ks[0], (H, D), D),
        "b0": uniform(ks[1], (H,), D),
        # MLP.linear1: Linear(H, H)
        "w1": uniform(ks[2], (H, H), H),
        "b1": uniform(ks[3], (H,), H),
        # MLP.linear2: Linear(H, M)
        "w2": uniform(ks[4], (M, H), H),
        "b2": uniform(ks[5], (M,), H),
        # QuadGoalMLP.linear: Linear(D, M, bias=False)
        "wg": uniform(ks[6], (M, D), D),
        # goal_point (non-trainable)
        "goal": goal_point.reshape(D).astype(jnp.float32),
    }


def reference(x, p):
    """Pure-JAX f32 reference for correctness check."""
    h = jnp.maximum(x @ p["w0"].T + p["b0"], 0.0)
    h = jnp.maximum(h @ p["w1"].T + p["b1"], 0.0)
    mlp_out = h @ p["w2"].T + p["b2"]
    goal_out = (x - p["goal"]) @ p["wg"].T
    return (jnp.sum(mlp_out ** 2, -1, keepdims=True)
            + jnp.sum(goal_out ** 2, -1, keepdims=True))


if __name__ == "__main__":
    key = jax.random.PRNGKey(0)
    k_x, k_x2, k_x3, k_g, k_p = jax.random.split(key, 5)

    D, H, M = 16, 32, 32
    params = init_params(k_p, D, H, M)                 # goal_point = zeros

    # Small-shape check (single grid step, full-array blocks).
    B = 8
    x_small = jax.random.normal(k_x, (B, D), jnp.float32)
    out_small = jax.block_until_ready(quad_goal_mlp(x_small, params))
    ref_small = reference(x_small, params)
    assert out_small.shape == (B, 1), out_small.shape
    assert jnp.allclose(out_small, ref_small, rtol=5e-2, atol=1e-2), (
        out_small, ref_small)

    # Multi-tile check: exercises the batch grid / pipelining / lane-dense out.
    B2 = 2048
    x_large = jax.random.normal(k_x2, (B2, D), jnp.float32)
    out_large = jax.block_until_ready(quad_goal_mlp(x_large, params, tile_b=512))
    ref_large = reference(x_large, params)
    assert out_large.shape == (B2, 1), out_large.shape
    assert jnp.allclose(out_large, ref_large, rtol=5e-2, atol=1e-2)

    # Nonzero goal point with x near it: the cancellation-sensitive regime the
    # review flagged; the kernel subtracts goal in f32 before the matmul so it
    # tracks the reference.
    goal = 4.0 * jax.random.normal(k_g, (D,), jnp.float32)
    params_g = init_params(k_p, D, H, M, goal_point=goal)
    x_near = goal[None, :] + 1e-3 * jax.random.normal(k_x3, (B, D), jnp.float32)
    out_near = jax.block_until_ready(quad_goal_mlp(x_near, params_g))
    ref_near = reference(x_near, params_g)
    assert jnp.allclose(out_near, ref_near, rtol=5e-2, atol=1e-2)

    print("KERNEL_OK")
</pallas_src>

<mosaic_0001>
module attributes {stable_mosaic.version = 11 : i64} {
  func.func @_quad_goal_kernel(%arg0: i32, %arg1: memref<8x16xf32, #tpu.memory_space<vmem>>, %arg2: memref<1x16xf32, #tpu.memory_space<vmem>>, %arg3: memref<64x16xf32, #tpu.memory_space<vmem>>, %arg4: memref<64x1xf32, #tpu.memory_space<vmem>>, %arg5: memref<32x32xf32, #tpu.memory_space<vmem>>, %arg6: memref<32x1xf32, #tpu.memory_space<vmem>>, %arg7: memref<32x32xf32, #tpu.memory_space<vmem>>, %arg8: memref<32x1xf32, #tpu.memory_space<vmem>>, %arg9: memref<1x8xf32, #tpu.memory_space<vmem>>) attributes {dimension_semantics = [#tpu.dimension_semantics<parallel>], iteration_bounds = array<i64: 1>, scalar_prefetch = 0 : i64, scratch_operands = 0 : i64, tpu.core_type = #tpu.core_type<tc>, window_params = [{transform_indices = @transform_0, window_bounds = array<i64: 8, 16>}, {pipeline_mode = #tpu.pipeline_mode<synchronous>, transform_indices = @transform_1, window_bounds = array<i64: 1, 16>}, {pipeline_mode = #tpu.pipeline_mode<synchronous>, transform_indices = @transform_2, window_bounds = array<i64: 64, 16>}, {pipeline_mode = #tpu.pipeline_mode<synchronous>, transform_indices = @transform_3, window_bounds = array<i64: 64, 1>}, {pipeline_mode = #tpu.pipeline_mode<synchronous>, transform_indices = @transform_4, window_bounds = array<i64: 32, 32>}, {pipeline_mode = #tpu.pipeline_mode<synchronous>, transform_indices = @transform_5, window_bounds = array<i64: 32, 1>}, {pipeline_mode = #tpu.pipeline_mode<synchronous>, transform_indices = @transform_6, window_bounds = array<i64: 32, 32>}, {pipeline_mode = #tpu.pipeline_mode<synchronous>, transform_indices = @transform_7, window_bounds = array<i64: 32, 1>}, {transform_indices = @transform_8, window_bounds = array<i64: 1, 8>}]} {
    %c0 = arith.constant 0 : index
    %c0_0 = arith.constant 0 : index
    %0 = vector.load %arg1[%c0, %c0_0] : memref<8x16xf32, #tpu.memory_space<vmem>>, vector<8x16xf32>
    %c0_1 = arith.constant 0 : index
    %c0_2 = arith.constant 0 : index
    %1 = vector.load %arg2[%c0_1, %c0_2] : memref<1x16xf32, #tpu.memory_space<vmem>>, vector<1x16xf32>
    %2 = vector.broadcast %1 : vector<1x16xf32> to vector<8x16xf32>
    %3 = arith.subf %0, %2 : vector<8x16xf32>
    %c0_3 = arith.constant 0 : index
    %c0_4 = arith.constant 0 : index
    %4 = vector.load %arg3[%c0_3, %c0_4] : memref<64x16xf32, #tpu.memory_space<vmem>>, vector<64x16xf32>
    %cst = arith.constant dense<0.000000e+00> : vector<64x8xf32>
    %5 = tpu.matmul %4, %3, %cst {dimension_numbers = #tpu.dot_dimension_numbers<[1], [1], [0], [0], [0, 0, 1, 0], [], []>} : vector<64x16xf32>, vector<8x16xf32>, vector<64x8xf32> -> vector<64x8xf32>
    %c0_5 = arith.constant 0 : index
    %c0_6 = arith.constant 0 : index
    %6 = vector.load %arg4[%c0_5, %c0_6] : memref<64x1xf32, #tpu.memory_space<vmem>>, vector<64x1xf32>
    %7 = vector.broadcast %6 : vector<64x1xf32> to vector<64x8xf32>
    %8 = arith.addf %5, %7 : vector<64x8xf32>
    %9 = vector.extract_strided_slice %8 {offsets = [32, 0], sizes = [32, 8], strides = [1, 1]} : vector<64x8xf32> to vector<32x8xf32>
    %10 = arith.mulf %9, %9 : vector<32x8xf32>
    %cst_7 = arith.constant dense<0.000000e+00> : vector<8xf32>
    %11 = vector.multi_reduction <add>, %10, %cst_7 [0] : vector<32x8xf32> to vector<8xf32>
    %12 = vector.shape_cast %11 : vector<8xf32> to vector<1x8xf32>
    %13 = vector.extract_strided_slice %8 {offsets = [0, 0], sizes = [32, 8], strides = [1, 1]} : vector<64x8xf32> to vector<32x8xf32>
    %cst_8 = arith.constant 0.000000e+00 : f32
    %14 = vector.broadcast %cst_8 : f32 to vector<32x8xf32>
    %15 = arith.maximumf %13, %14 : vector<32x8xf32>
    %c0_9 = arith.constant 0 : index
    %c0_10 = arith.constant 0 : index
    %16 = vector.load %arg5[%c0_9, %c0_10] : memref<32x32xf32, #tpu.memory_space<vmem>>, vector<32x32xf32>
    %cst_11 = arith.constant dense<0.000000e+00> : vector<32x8xf32>
    %17 = tpu.matmul %16, %15, %cst_11 {dimension_numbers = #tpu.dot_dimension_numbers<[1], [0], [0], [1], [0, 0, 1, 1], [], []>} : vector<32x32xf32>, vector<32x8xf32>, vector<32x8xf32> -> vector<32x8xf32>
    %c0_12 = arith.constant 0 : index
    %c0_13 = arith.constant 0 : index
    %18 = vector.load %arg6[%c0_12, %c0_13] : memref<32x1xf32, #tpu.memory_space<vmem>>, vector<32x1xf32>
    %19 = vector.broadcast %18 : vector<32x1xf32> to vector<32x8xf32>
    %20 = arith.addf %17, %19 : vector<32x8xf32>
    %cst_14 = arith.constant 0.000000e+00 : f32
    %21 = vector.broadcast %cst_14 : f32 to vector<32x8xf32>
    %22 = arith.maximumf %20, %21 : vector<32x8xf32>
    %c0_15 = arith.constant 0 : index
    %c0_16 = arith.constant 0 : index
    %23 = vector.load %arg7[%c0_15, %c0_16] : memref<32x32xf32, #tpu.memory_space<vmem>>, vector<32x32xf32>
    %cst_17 = arith.constant dense<0.000000e+00> : vector<32x8xf32>
    %24 = tpu.matmul %23, %22, %cst_17 {dimension_numbers = #tpu.dot_dimension_numbers<[1], [0], [0], [1], [0, 0, 1, 1], [], []>} : vector<32x32xf32>, vector<32x8xf32>, vector<32x8xf32> -> vector<32x8xf32>
    %c0_18 = arith.constant 0 : index
    %c0_19 = arith.constant 0 : index
    %25 = vector.load %arg8[%c0_18, %c0_19] : memref<32x1xf32, #tpu.memory_space<vmem>>, vector<32x1xf32>
    %26 = vector.broadcast %25 : vector<32x1xf32> to vector<32x8xf32>
    %27 = arith.addf %24, %26 : vector<32x8xf32>
    %28 = arith.mulf %27, %27 : vector<32x8xf32>
    %cst_20 = arith.constant dense<0.000000e+00> : vector<8xf32>
    %29 = vector.multi_reduction <add>, %28, %cst_20 [0] : vector<32x8xf32> to vector<8xf32>
    %30 = vector.shape_cast %29 : vector<8xf32> to vector<1x8xf32>
    %31 = arith.addf %30, %12 : vector<1x8xf32>
    %c0_21 = arith.constant 0 : index
    %c0_22 = arith.constant 0 : index
    %32 = vector.load %arg9[%c0_21, %c0_22] : memref<1x8xf32, #tpu.memory_space<vmem>>, vector<1x8xf32>
    tpu.vector_store %arg9[%c0_21, %c0_22], %31 {strides = array<i32>} : memref<1x8xf32, #tpu.memory_space<vmem>>, vector<1x8xf32>,
    return
  }
  func.func @transform_0(%arg0: i32) -> (i32, i32) {
    %c0_i32 = arith.constant 0 : i32
    %c0_i32_0 = arith.constant 0 : i32
    return %arg0, %c0_i32 : i32, i32
  }
  func.func @transform_1(%arg0: i32) -> (i32, i32) {
    %c0_i32 = arith.constant 0 : i32
    %c0_i32_0 = arith.constant 0 : i32
    %c0_i32_1 = arith.constant 0 : i32
    return %c0_i32, %c0_i32_0 : i32, i32
  }
  func.func @transform_2(%arg0: i32) -> (i32, i32) {
    %c0_i32 = arith.constant 0 : i32
    %c0_i32_0 = arith.constant 0 : i32
    %c0_i32_1 = arith.constant 0 : i32
    return %c0_i32, %c0_i32_0 : i32, i32
  }
  func.func @transform_3(%arg0: i32) -> (i32, i32) {
    %c0_i32 = arith.constant 0 : i32
    %c0_i32_0 = arith.constant 0 : i32
    %c0_i32_1 = arith.constant 0 : i32
    return %c0_i32, %c0_i32_0 : i32, i32
  }
  func.func @transform_4(%arg0: i32) -> (i32, i32) {
    %c0_i32 = arith.constant 0 : i32
    %c0_i32_0 = arith.constant 0 : i32
    %c0_i32_1 = arith.constant 0 : i32
    return %c0_i32, %c0_i32_0 : i32, i32
  }
  func.func @transform_5(%arg0: i32) -> (i32, i32) {
    %c0_i32 = arith.constant 0 : i32
    %c0_i32_0 = arith.constant 0 : i32
    %c0_i32_1 = arith.constant 0 : i32
    return %c0_i32, %c0_i32_0 : i32, i32
  }
  func.func @transform_6(%arg0: i32) -> (i32, i32) {
    %c0_i32 = arith.constant 0 : i32
    %c0_i32_0 = arith.constant 0 : i32
    %c0_i32_1 = arith.constant 0 : i32
    return %c0_i32, %c0_i32_0 : i32, i32
  }
  func.func @transform_7(%arg0: i32) -> (i32, i32) {
    %c0_i32 = arith.constant 0 : i32
    %c0_i32_0 = arith.constant 0 : i32
    %c0_i32_1 = arith.constant 0 : i32
    return %c0_i32, %c0_i32_0 : i32, i32
  }
  func.func @transform_8(%arg0: i32) -> (i32, i32) {
    %c0_i32 = arith.constant 0 : i32
    %c0_i32_0 = arith.constant 0 : i32
    return %c0_i32, %arg0 : i32, i32
  }
}

</mosaic_0001>

<bundles_post_ra>
// kernel: tpu_custom_call.1
= control target key start
LH: loop header
LB: loop body
LE: loop exit
PB: predicated region body
PF: predicated region fallthrough
CT: control target
= control target key end

     0   :  { %v412_v2 = vmov 0   ;;  %vm92_vm0 = vcmask 130048   ;;  %s590_s0 = inlined_call_operand.vmem [shape: f32[8,16], index: 0, kind: input, shape index: {}]   ;;  %s591_s1 = inlined_call_operand.vmem [shape: f32[1,16], index: 1, kind: input, shape index: {}]   ;;  %s592_s2 = inlined_call_operand.vmem [shape: f32[64,16], index: 2, kind: input, shape index: {}]   ;;  %s593_s3 = inlined_call_operand.vmem [shape: f32[64,1], index: 3, kind: input, shape index: {}]   ;;  %s594_s4 = inlined_call_operand.vmem [shape: f32[32,32], index: 4, kind: input, shape index: {}]   ;;  %s595_s5 = inlined_call_operand.vmem [shape: f32[32,1], index: 5, kind: input, shape index: {}]   ;;  %s596_s6 = inlined_call_operand.vmem [shape: f32[32,32], index: 6, kind: input, shape index: {}]   ;;  %s597_s7 = inlined_call_operand.vmem [shape: f32[32,1], index: 7, kind: input, shape index: {}]   ;;  %s598_s8 = inlined_call_operand.hbm [shape: f32[1,8], index: 8, kind: output, shape index: {}]  }
   0x1   :  { %v47_v0 = vld [vmem:[%s593_s3 + $0x18] sm:$0xff]  ;;  %v30_v1 = vld [vmem:[%s590_s0] sm:$0xff]  ;;  %382 = vset.pattern.permute.xlu0 %v412_v2  ;;  %383 = vset.pattern.permute.xlu1 %v412_v2  ;;  %v45_v4 = vld [vmem:[%s593_s3 + $0x8] sm:$0xff] }
   0x2   :  { %v385_v3 = vld [vmem:[%s591_s1] ss:$0 sm:$0xff]  ;;  %69 = vperm.xlu0 %382, %v47_v0   ;;  %59 = vperm.xlu1 %383, %v45_v4   ;;  %v41_v7 = vld [vmem:[%s592_s2 + $0x28] sm:$0xff] }
   0x3   :  { %v35_v5 = vsub.f32 %v30_v1, %v385_v3  ;;  %384 = vset.pattern.permute.xlu2 %v412_v2  ;;  %v36_v6 = vld [vmem:[%s592_s2] sm:$0xff] }
   0x5   :  { %362 = vmatpush.xpose.msk.msra.mxu0 %vm92_vm0, %v35_v5  ;;  %379 = vmatpush.xpose.msk.msra.mxu3 %vm92_vm0, %v35_v5 }
   0x6   :  { %13 = vsyncpa [#allocation3], 0  ;;  %v46_v8 = vld [vmem:[%s593_s3 + $0x10] sm:$0xff]  ;;  %v44_v9 = vld [vmem:[%s593_s3] sm:$0xff]  ;;  %vm211_vm1 = vcmask 261120   ;;  %vm165_vm2 = vcmask 64512  }
   0x7   :  { %v190_v10 = vld [vmem:[%s595_s5 + $0x18] sm:$0xff]  ;;  %v37_v11 = vld [vmem:[%s592_s2 + $0x8] sm:$0xff]  ;;  %v42_v12 = vld [vmem:[%s592_s2 + $0x30] sm:$0xff]  ;;  %s353_s20 = sshll.u32 %s598_s8, 4  ;;  %vm344_vm3 = vcmask 57344   ;;  %s354_s20 = int_to_ptr.hbm [resolvable:$true] %s353_s20 }
   0x8   :  { %363 = vmatmul.msk.f32.vlgmr.msra.gmra.mxu0 %vm92_vm0, %v36_v6  ;;  %368 = vmatmul.msk.f32.vlgmr.msra.gmra.mxu3 %vm92_vm0, %v41_v7  ;;  %v188_v13 = vld [vmem:[%s595_s5 + $0x8] sm:$0xff]  ;;  %v187_v14 = vld [vmem:[%s595_s5] sm:$0xff]  ;;  %v189_v15 = vld [vmem:[%s595_s5 + $0x10] sm:$0xff] }
   0x9   :  { %208 = vperm.xlu2 %384, %v190_v10   ;;  %v38_v16 = vld [vmem:[%s592_s2 + $0x10] sm:$0xff]  ;;  %v43_v17 = vld [vmem:[%s592_s2 + $0x38] sm:$0xff]  ;;  %v49_v18 = vld [vmem:[%s593_s3 + $0x28] sm:$0xff] }
   0xa   :  { %64 = vperm.xlu0 %382, %v46_v8   ;;  %54 = vperm.xlu1 %383, %v44_v9   ;;  %v261_v19 = vld [vmem:[%s597_s7] sm:$0xff]  ;;  %v39_v21 = vld [vmem:[%s592_s2 + $0x18] sm:$0xff]  ;;  %v50_v22 = vld [vmem:[%s593_s3 + $0x30] sm:$0xff] }
   0xb   :  { %v48_v20 = vld [vmem:[%s593_s3 + $0x20] sm:$0xff]  ;;  %v263_v23 = vld [vmem:[%s597_s7 + $0x10] sm:$0xff]  ;;  %v262_v24 = vld [vmem:[%s597_s7 + $0x8] sm:$0xff] }
   0xc   :  { %v40_v25 = vld [vmem:[%s592_s2 + $0x20] sm:$0xff]  ;;  %v264_v26 = vld [vmem:[%s597_s7 + $0x18] sm:$0xff]  ;;  %v184_v45 = vld [vmem:[%s594_s4 + $0x8] sm:$0xff] }
   0xd   :  { %v51_v27 = vld [vmem:[%s593_s3 + $0x38] sm:$0xff]  ;;  %v183_v44 = vld [vmem:[%s594_s4] sm:$0xff]  ;;  %v185_v46 = vld [vmem:[%s594_s4 + $0x10] sm:$0xff] }
   0xe   :  { %v186_v47 = vld [vmem:[%s594_s4 + $0x18] sm:$0xff]  ;;  %v257_v0 = vld [vmem:[%s596_s6] sm:$0xff]  ;;  %v258_v1 = vld [vmem:[%s596_s6 + $0x8] sm:$0xff] }
   0xf   :  { %v259_v2 = vld [vmem:[%s596_s6 + $0x10] sm:$0xff]  ;;  %v260_v3 = vld [vmem:[%s596_s6 + $0x18] sm:$0xff]  ;;  %s413_s6 = smov [#allocation2]  }
  0x10   :  { %364 = vmatmul.msk.f32.gmra.mxu0 %vm92_vm0, %v37_v11  ;;  %369 = vmatmul.msk.f32.gmra.mxu3 %vm92_vm0, %v42_v12  ;;  %s351_s17 = sshll.u32 %s413_s6, 4  ;;  %s352_s17 = int_to_ptr.vmem [resolvable:$true] %s351_s17 }
  0x11   :  { %203 = vperm.xlu2 %384, %v189_v15  }
  0x12   :  { %198 = vperm.xlu0 %382, %v188_v13   ;;  %193 = vperm.xlu1 %383, %v187_v14  }
  0x18   :  { %365 = vmatmul.msk.f32.gmra.mxu0 %vm92_vm0, %v38_v16  ;;  %370 = vmatmul.msk.f32.gmra.mxu3 %vm92_vm0, %v43_v17 }
  0x19   :  { %74 = vperm.xlu2 %384, %v48_v20  }
  0x1a   :  { %79 = vperm.xlu0 %382, %v49_v18   ;;  %267 = vperm.xlu1 %383, %v261_v19  }
  0x20   :  { %366 = vmatmul.msk.f32.gmra.mxu0 %vm92_vm0, %v39_v21 }
  0x21   :  { %272 = vperm.xlu2 %384, %v262_v24  }
  0x22   :  { %84 = vperm.xlu0 %382, %v50_v22   ;;  %277 = vperm.xlu1 %383, %v263_v23  }
  0x28   :  { %367 = vmatmul.msk.f32.gmra.mxu0 %vm92_vm0, %v40_v25 }
  0x29   :  { %89 = vperm.xlu2 %384, %v51_v27  }
  0x2a   :  { %282 = vperm.xlu0 %382, %v264_v26  }
  0x63   :  { %v209_v50 = vpop.permute.xlu2 %208 }
  0x6b   :  { %v204_v52 = vpop.permute.xlu2 %203 }
  0x73   :  { %v75_v4 = vpop.permute.xlu2 %74 }
  0x74   :  { %v70_v30 = vpop.permute.xlu0 %69  ;;  %v60_v32 = vpop.permute.xlu1 %59 }
  0x7b   :  { %v273_v6 = vpop.permute.xlu2 %272 }
  0x7c   :  { %v65_v33 = vpop.permute.xlu0 %64  ;;  %v55_v39 = vpop.permute.xlu1 %54 }
  0x83   :  { %v90_v14 = vpop.permute.xlu2 %89 }
  0x84   :  { %v199_v56 = vpop.permute.xlu0 %198  ;;  %v194_v59 = vpop.permute.xlu1 %193 }
  0x85   :  { %v137_v28 = vpop.f32.mrf.mxu0 }
  0x86   :  { %v138_v40 = vadd.f32 %v137_v28, %v55_v39 }
  0x88   :  { %v179_v43 = vmax.f32 %v138_v40, 0.0 }
  0x8b   :  { %v152_v5 = vpop.f32.mrf.mxu3 }
  0x8c   :  { %v80_v7 = vpop.permute.xlu0 %79  ;;  %v268_v19 = vpop.permute.xlu1 %267 }
  0x8d   :  { %v140_v29 = vpop.f32.mrf.mxu0  ;;  %v153_v12 = vadd.f32 %v152_v5, %v80_v7 }
  0x8e   :  { %v141_v37 = vadd.f32 %v140_v29, %v60_v32 }
  0x8f   :  { %v162_v17 = vmul.f32 %v153_v12, %v153_v12 }
  0x90   :  { %v180_v42 = vmax.f32 %v141_v37, 0.0 }
  0x91   :  { %v167_v23 = vsel %vm165_vm2, %v162_v17, 0.0 }
  0x93   :  { %v155_v8 = vpop.f32.mrf.mxu3 }
  0x94   :  { %v85_v15 = vpop.permute.xlu0 %84 }
  0x95   :  { %v143_v31 = vpop.f32.mrf.mxu0  ;;  %v156_v18 = vadd.f32 %v155_v8, %v85_v15 }
  0x96   :  { %v144_v35 = vadd.f32 %v143_v31, %v65_v33  ;;  %v278_v31 = vpop.permute.xlu1 %277 }
  0x97   :  { %v163_v24 = vmul.f32 %v156_v18, %v156_v18 }
  0x98   :  { %v181_v41 = vmax.f32 %v144_v35, 0.0 }
  0x99   :  { %v169_v27 = vsel %vm165_vm2, %v163_v24, 0.0 }
  0x9b   :  { %v158_v16 = vpop.f32.mrf.mxu3 }
  0x9c   :  { %v159_v21 = vadd.f32 %v158_v16, %v90_v14 }
  0x9d   :  { %v146_v34 = vpop.f32.mrf.mxu0 }
  0x9e   :  { %v147_v36 = vadd.f32 %v146_v34, %v70_v30  ;;  %v164_v26 = vmul.f32 %v159_v21, %v159_v21 }
  0xa0   :  { %v182_v38 = vmax.f32 %v147_v36, 0.0  ;;  %v171_v29 = vsel %vm165_vm2, %v164_v26, 0.0 }
  0xa2   :  { %236 = vmatpush.msra.mxu1 %v182_v38 }
  0xa4   :  { %237 = vmatpush.msra.mxu1 %v181_v41  ;;  %v283_v41 = vpop.permute.xlu0 %282 }
  0xa5   :  { %v149_v9 = vpop.f32.mrf.mxu0 }
  0xa6   :  { %238 = vmatpush.msra.mxu1 %v180_v42  ;;  %v150_v10 = vadd.f32 %v149_v9, %v75_v4 }
  0xa8   :  { %239 = vmatpush.msra.mxu1 %v179_v43  ;;  %v161_v13 = vmul.f32 %v150_v10, %v150_v10 }
  0xa9   :  { %371 = vmatmul.msk.f32.vlgmr.msra.gmra.mxu1 %vm211_vm1, %v183_v44 }
  0xaa   :  { %v166_v20 = vsel %vm165_vm2, %v161_v13, 0.0 }
  0xab   :  { %v168_v25 = vadd.f32 %v167_v23, %v166_v20 }
  0xad   :  { %v170_v28 = vadd.f32 %v169_v27, %v168_v25 }
  0xaf   :  { %v172_v35 = vadd.f32 %v171_v29, %v170_v28 }
  0xb1   :  { %372 = vmatmul.msk.f32.gmra.mxu1 %vm211_vm1, %v184_v45  ;;  %v173_v39 = vrot.slane %v172_v35, 4 }
  0xb9   :  { %373 = vmatmul.msk.f32.gmra.mxu1 %vm211_vm1, %v185_v46  ;;  %v174_v46 = vadd.f32 %v173_v39, %v172_v35 }
  0xc1   :  { %374 = vmatmul.msk.f32.gmra.mxu1 %vm211_vm1, %v186_v47 }
 0x126   :  { %v241_v48 = vpop.f32.mrf.mxu1 }
 0x127   :  { %v242_v60 = vadd.f32 %v241_v48, %v194_v59 }
 0x129   :  { %v253_v63 = vmax.f32 %v242_v60, 0.0 }
 0x12e   :  { %v244_v49 = vpop.f32.mrf.mxu1 }
 0x12f   :  { %v245_v57 = vadd.f32 %v244_v49, %v199_v56 }
 0x131   :  { %v254_v62 = vmax.f32 %v245_v57, 0.0 }
 0x136   :  { %v247_v51 = vpop.f32.mrf.mxu1 }
 0x137   :  { %v248_v54 = vadd.f32 %v247_v51, %v204_v52  ;;  %v175_v51 = vrot.slane %v174_v46, 2 }
 0x139   :  { %v255_v61 = vmax.f32 %v248_v54, 0.0  ;;  %v176_v54 = vadd.f32 %v175_v51, %v174_v46 }
 0x13e   :  { %v250_v53 = vpop.f32.mrf.mxu1 }
 0x13f   :  { %v251_v55 = vadd.f32 %v250_v53, %v209_v50 }
 0x141   :  { %v256_v58 = vmax.f32 %v251_v55, 0.0 }
 0x143   :  { %309 = vmatpush.msra.mxu2 %v256_v58  ;;  %v177_v58 = vrot.slane %v176_v54, 1 }
 0x145   :  { %310 = vmatpush.msra.mxu2 %v255_v61  ;;  %v178_v60 = vadd.f32 %v177_v58, %v176_v54 }
 0x147   :  { %311 = vmatpush.msra.mxu2 %v254_v62 }
 0x149   :  { %312 = vmatpush.msra.mxu2 %v253_v63 }
 0x14a   :  { %375 = vmatmul.msk.f32.vlgmr.msra.gmra.mxu2 %vm211_vm1, %v257_v0 }
 0x152   :  { %376 = vmatmul.msk.f32.gmra.mxu2 %vm211_vm1, %v258_v1 }
 0x15a   :  { %377 = vmatmul.msk.f32.gmra.mxu2 %vm211_vm1, %v259_v2 }
 0x162   :  { %378 = vmatmul.msk.f32.gmra.mxu2 %vm211_vm1, %v260_v3 }
 0x1cd   :  { %v314_v11 = vpop.f32.mrf.mxu2 }
 0x1ce   :  { %v315_v33 = vadd.f32 %v314_v11, %v268_v19 }
 0x1d0   :  { %v326_v37 = vmul.f32 %v315_v33, %v315_v33 }
 0x1d2   :  { %v330_v43 = vsel %vm165_vm2, %v326_v37, 0.0 }
 0x1d5   :  { %v317_v22 = vpop.f32.mrf.mxu2 }
 0x1d6   :  { %v318_v30 = vadd.f32 %v317_v22, %v273_v6 }
 0x1d8   :  { %v327_v36 = vmul.f32 %v318_v30, %v318_v30 }
 0x1da   :  { %v331_v40 = vsel %vm165_vm2, %v327_v36, 0.0 }
 0x1db   :  { %v332_v47 = vadd.f32 %v331_v40, %v330_v43 }
 0x1dd   :  { %v320_v32 = vpop.f32.mrf.mxu2 }
 0x1de   :  { %v321_v34 = vadd.f32 %v320_v32, %v278_v31 }
 0x1e0   :  { %v328_v38 = vmul.f32 %v321_v34, %v321_v34 }
 0x1e2   :  { %v333_v44 = vsel %vm165_vm2, %v328_v38, 0.0 }
 0x1e3   :  { %v334_v49 = vadd.f32 %v333_v44, %v332_v47 }
 0x1e5   :  { %v323_v42 = vpop.f32.mrf.mxu2 }
 0x1e6   :  { %v324_v45 = vadd.f32 %v323_v42, %v283_v41 }
 0x1e8   :  { %v329_v48 = vmul.f32 %v324_v45, %v324_v45 }
 0x1ea   :  { %v335_v50 = vsel %vm165_vm2, %v329_v48, 0.0 }
 0x1eb   :  { %v336_v52 = vadd.f32 %v335_v50, %v334_v49 }
 0x1ed   :  { %v337_v53 = vrot.slane %v336_v52, 4 }
 0x1ef   :  { %v338_v55 = vadd.f32 %v337_v53, %v336_v52 }
 0x1f1   :  { %v339_v56 = vrot.slane %v338_v55, 2 }
 0x1f3   :  { %v340_v57 = vadd.f32 %v339_v56, %v338_v55 }
 0x1f5   :  { %v341_v59 = vrot.slane %v340_v57, 1 }
 0x1f7   :  { %v342_v61 = vadd.f32 %v341_v59, %v340_v57 }
 0x1f9   :  { %v343_v62 = vadd.f32 %v342_v61, %v178_v60 }
 0x1fb   :  { %345 = vst.msk [vmem:[#allocation2] sm:$0x1] %vm344_vm3, %v343_v62 }
 0x1fc   :  { %356 = dma.vmem_to_hbm [thread:$0]  %s352_s17, 16, %s354_s20, [#allocation3]  }
 0x1fd   :  { %410 = dma.done.wait [#allocation3], 16  }
 0x1fe   :  { %411 = vsyncadd [#allocation3], 4294967280 }
 0x1ff   :  { %361 = vsyncpa [#allocation3], 1 }

</bundles_post_ra>
